<compile_context>
chip_gen: v5e
topology: v5e:2x2
jax: 0.10.0
libtpu: 0.0.40
codegen_flags: <defaults>
</compile_context>

<pallas_src>
import jax
import jax.numpy as jnp
from jax import lax
from jax.experimental import pallas as pl
from jax.experimental.pallas import tpu as pltpu

# ---------------- problem sizes (small, forward-consistent) ----------------
B_REAL = 4       # real batch
BB     = 8       # batch tile (one f32 sublane group); real batch is padded to this
D      = 8       # dimensions
V      = 32      # vocab_size
V_PAD  = 128     # vocab padded to a full lane group
H      = 64      # temporal MLP hidden size
T_EMB  = 32      # sinusoidal time-embedding dim
GAMMA  = 1.0     # constant thermostat rate
NEG_PAD = -1e30  # logits bias for padded vocab columns (exp -> 0 exactly)


# ---------------------------- glue (plain JAX) -----------------------------
def timestep_embedding(times, dim=T_EMB, max_positions=10000.0):
    """transformer_timestep_embedding equivalent (sin|cos)."""
    half = dim // 2
    freqs = jnp.exp(
        -jnp.log(max_positions) * jnp.arange(half, dtype=jnp.float32) / (half - 1)
    )
    args = times.astype(jnp.float32)[:, None] * freqs[None, :]
    return jnp.concatenate([jnp.sin(args), jnp.cos(args)], axis=1)  # [B, T_EMB]


def prepare_params(params):
    """One-time parameter repacking: fuse input matmuls, lane-pad the output head."""
    w_in = jnp.concatenate([params["w1"], params["wt"]], axis=0)       # [D+T_EMB, H]
    b_in = params["b1"] + params["bt"]                                  # [1, H]
    # Pad vocab axis of the output head to 128 lanes; pad weight columns are 0
    # and pad bias columns are -1e30 so softmax over 128 lanes == softmax over V.
    w2p = jnp.pad(params["w2"].reshape(H, D, V),
                  ((0, 0), (0, 0), (0, V_PAD - V))).reshape(H, D * V_PAD)
    b2p = jnp.pad(params["b2"].reshape(1, D, V),
                  ((0, 0), (0, 0), (0, V_PAD - V)),
                  constant_values=NEG_PAD).reshape(1, D * V_PAD)
    return {"w_in": w_in, "b_in": b_in, "w2p": w2p, "b2p": b2p}


# ------------------------------ Pallas kernel ------------------------------
def _rate_kernel(xin_ref, xi_ref, cB_ref, cC_ref,
                 w_in_ref, b_in_ref, w2_ref, b2_ref, out_ref):
    # Fused input matmul: [xf | time_emb] @ [w1 ; wt] + (b1 + bt), ReLU.
    h = jnp.dot(xin_ref[...], w_in_ref[...], preferred_element_type=jnp.float32)
    h = jnp.maximum(h + b_in_ref[...], 0.0)                            # [BB, H]

    # Output head: logits over (dimension, padded vocab).
    logits = jnp.dot(h, w2_ref[...], preferred_element_type=jnp.float32) + b2_ref[...]
    logits = logits.reshape(BB, D, V_PAD)                              # [BB, D, 128]

    # Vectorized per-dimension softmax (pad columns carry -1e30 -> exp == 0).
    m = jnp.max(logits, axis=-1, keepdims=True)                        # [BB, D, 1]
    p = jnp.exp(logits - m)                                            # [BB, D, 128]
    denom = jnp.sum(p, axis=-1, keepdims=True)                         # [BB, D, 1]
    inv = pl.reciprocal(denom, approx=True)
    inv = inv * (2.0 - denom * inv)          # one Newton step -> f32-level accuracy

    # Gather p at the current token id via one-hot compare (no relayout).
    lane = lax.broadcasted_iota(jnp.int32, (BB, D, V_PAD), 2)
    onehot = lane == xi_ref[...][:, :, None]
    where_p = jnp.sum(jnp.where(onehot, p, 0.0), axis=-1, keepdims=True)  # [BB, D, 1]

    # Fold the softmax normalization into the thermostat coefficients (A = 1):
    #   rates = 1 + B * probs + C * where_iam
    #         = 1 + (B * inv_denom) * p + (C * inv_denom) * where_p
    scale_b = cB_ref[...][:, :, None] * inv                            # [BB, D, 1]
    scale_c = cC_ref[...][:, :, None] * inv                            # [BB, D, 1]
    out_ref[...] = 1.0 + scale_b * p + scale_c * where_p               # one full store


# ------------------------------ wrapper -------------------------------------
@jax.jit
def classification_forward_rate(x_tokens, times, prepped):
    """x_tokens: [B, D] float (integer-valued token ids); times: [B] float."""
    b_real = x_tokens.shape[0]
    b_pad = ((b_real + BB - 1) // BB) * BB

    xf = x_tokens.astype(jnp.float32)
    xi = x_tokens.astype(jnp.int32)
    temb = timestep_embedding(times)                                   # [B, T_EMB]
    xin = jnp.concatenate([xf, temb], axis=1)                          # [B, D+T_EMB]

    # Constant thermostat => beta_integral(1, t) = GAMMA * (1 - t)  (closed form).
    t = times.astype(jnp.float32)
    beta_int = GAMMA * (1.0 - t)
    w_1t = jnp.exp(-float(V) * beta_int)
    # TODO(synk): as in the PyTorch module, B -> inf as t -> 1; general inputs
    # need an epsilon clamp on (1 - w_1t).
    c_b = (w_1t * float(V) / (1.0 - w_1t)).reshape(b_real, 1)          # [B, 1]
    c_c = w_1t.reshape(b_real, 1)                                      # [B, 1]

    # Pad batch to a full sublane tile; pad rows are inert (coefs = 0 -> rates = 1).
    pad = b_pad - b_real
    xin_p = jnp.pad(xin, ((0, pad), (0, 0)))
    xi_p = jnp.pad(xi, ((0, pad), (0, 0)))
    c_b_p = jnp.pad(c_b, ((0, pad), (0, 0)))
    c_c_p = jnp.pad(c_c, ((0, pad), (0, 0)))

    out = pl.pallas_call(
        _rate_kernel,
        out_shape=jax.ShapeDtypeStruct((b_pad, D, V_PAD), jnp.float32),
        grid_spec=pltpu.PrefetchScalarGridSpec(
            num_scalar_prefetch=0,
            grid=(b_pad // BB,),                      # batch-tile grid (parallel)
            in_specs=[
                pl.BlockSpec((BB, D + T_EMB), lambda i: (i, 0)),   # fused input
                pl.BlockSpec((BB, D), lambda i: (i, 0)),           # token ids
                pl.BlockSpec((BB, 1), lambda i: (i, 0)),           # B coefficient
                pl.BlockSpec((BB, 1), lambda i: (i, 0)),           # C coefficient
                pl.BlockSpec((D + T_EMB, H), lambda i: (0, 0)),    # fused W_in
                pl.BlockSpec((1, H), lambda i: (0, 0)),            # fused b_in
                pl.BlockSpec((H, D * V_PAD), lambda i: (0, 0)),    # padded W2
                pl.BlockSpec((1, D * V_PAD), lambda i: (0, 0)),    # padded b2
            ],
            out_specs=pl.BlockSpec((BB, D, V_PAD), lambda i: (i, 0, 0)),
        ),
        compiler_params=pltpu.CompilerParams(
            dimension_semantics=("parallel",)),       # 2x on v7x once batch > 1 tile
    )(xin_p, xi_p, c_b_p, c_c_p,
      prepped["w_in"], prepped["b_in"], prepped["w2p"], prepped["b2p"])

    return out[:b_real, :, :V]                                         # [B, D, V]


# ------------------------- pure-JAX reference --------------------------------
def reference_forward(x_tokens, times, params):
    xf = x_tokens.astype(jnp.float32)
    temb = timestep_embedding(times)
    h = xf @ params["w1"] + params["b1"] + temb @ params["wt"] + params["bt"]
    h = jnp.maximum(h, 0.0)
    logits = (h @ params["w2"] + params["b2"]).reshape(B_REAL, D, V)
    probs = jax.nn.softmax(logits, axis=2)
    where_iam = jnp.take_along_axis(
        probs, x_tokens.astype(jnp.int32)[:, :, None], axis=2)
    beta_int = GAMMA * (1.0 - times.astype(jnp.float32))
    w_1t = jnp.exp(-V * beta_int)
    b_coef = w_1t * V / (1.0 - w_1t)
    c_coef = w_1t
    return 1.0 + b_coef[:, None, None] * probs + c_coef[:, None, None] * where_iam


# ------------------------------- main ----------------------------------------
if __name__ == "__main__":
    key = jax.random.PRNGKey(0)
    k_x, k_t, k_wt, k_w1, k_w2 = jax.random.split(key, 5)

    # deterministic synthetic parameters (shapes implied by the module's __init__)
    params = {
        "wt": jax.random.normal(k_wt, (T_EMB, H), jnp.float32) / jnp.sqrt(T_EMB),
        "bt": jnp.zeros((1, H), jnp.float32),
        "w1": jax.random.normal(k_w1, (D, H), jnp.float32) / jnp.sqrt(D),
        "b1": jnp.zeros((1, H), jnp.float32),
        "w2": jax.random.normal(k_w2, (H, D * V), jnp.float32) / jnp.sqrt(H),
        "b2": jnp.zeros((1, D * V), jnp.float32),
    }
    prepped = prepare_params(params)

    # x: [batch, dimensions] integer token ids (stored as float, like torch)
    x_tokens = jax.random.randint(k_x, (B_REAL, D), 0, V).astype(jnp.float32)
    times = jax.random.uniform(k_t, (B_REAL,), jnp.float32, minval=0.05, maxval=0.9)

    rates = classification_forward_rate(x_tokens, times, prepped)
    rates = jax.block_until_ready(rates)

    ref = reference_forward(x_tokens, times, params)
    assert rates.shape == (B_REAL, D, V)
    assert jnp.allclose(rates, ref, rtol=1e-4, atol=1e-4), "mismatch vs reference"

    # TODO(synk): EMA bookkeeping, Categorical sampling and the telegram-bridge
    # utilities are training/sampling helpers, not part of forward(); omitted.
    print("KERNEL_OK")
</pallas_src>

<mosaic_0001>
module attributes {stable_mosaic.version = 11 : i64} {
  func.func @_rate_kernel(%arg0: i32, %arg1: memref<8x40xf32, #tpu.memory_space<vmem>>, %arg2: memref<8x8xi32, #tpu.memory_space<vmem>>, %arg3: memref<8x1xf32, #tpu.memory_space<vmem>>, %arg4: memref<8x1xf32, #tpu.memory_space<vmem>>, %arg5: memref<40x64xf32, #tpu.memory_space<vmem>>, %arg6: memref<1x64xf32, #tpu.memory_space<vmem>>, %arg7: memref<64x1024xf32, #tpu.memory_space<vmem>>, %arg8: memref<1x1024xf32, #tpu.memory_space<vmem>>, %arg9: memref<8x8x128xf32, #tpu.memory_space<vmem>>) attributes {dimension_semantics = [#tpu.dimension_semantics<parallel>], iteration_bounds = array<i64: 1>, scalar_prefetch = 0 : i64, scratch_operands = 0 : i64, tpu.core_type = #tpu.core_type<tc>, window_params = [{transform_indices = @transform_0, window_bounds = array<i64: 8, 40>}, {transform_indices = @transform_1, window_bounds = array<i64: 8, 8>}, {transform_indices = @transform_2, window_bounds = array<i64: 8, 1>}, {transform_indices = @transform_3, window_bounds = array<i64: 8, 1>}, {pipeline_mode = #tpu.pipeline_mode<synchronous>, transform_indices = @transform_4, window_bounds = array<i64: 40, 64>}, {pipeline_mode = #tpu.pipeline_mode<synchronous>, transform_indices = @transform_5, window_bounds = array<i64: 1, 64>}, {pipeline_mode = #tpu.pipeline_mode<synchronous>, transform_indices = @transform_6, window_bounds = array<i64: 64, 1024>}, {pipeline_mode = #tpu.pipeline_mode<synchronous>, transform_indices = @transform_7, window_bounds = array<i64: 1, 1024>}, {transform_indices = @transform_8, window_bounds = array<i64: 8, 8, 128>}]} {
    %c0 = arith.constant 0 : index
    %c0_0 = arith.constant 0 : index
    %0 = vector.load %arg1[%c0, %c0_0] : memref<8x40xf32, #tpu.memory_space<vmem>>, vector<8x40xf32>
    %c0_1 = arith.constant 0 : index
    %c0_2 = arith.constant 0 : index
    %1 = vector.load %arg5[%c0_1, %c0_2] : memref<40x64xf32, #tpu.memory_space<vmem>>, vector<40x64xf32>
    %cst = arith.constant dense<0.000000e+00> : vector<8x64xf32>
    %2 = tpu.matmul %0, %1, %cst {dimension_numbers = #tpu.dot_dimension_numbers<[1], [0], [0], [1], [0, 0, 1, 1], [], []>} : vector<8x40xf32>, vector<40x64xf32>, vector<8x64xf32> -> vector<8x64xf32>
    %c0_3 = arith.constant 0 : index
    %c0_4 = arith.constant 0 : index
    %3 = vector.load %arg6[%c0_3, %c0_4] : memref<1x64xf32, #tpu.memory_space<vmem>>, vector<1x64xf32>
    %4 = vector.broadcast %3 : vector<1x64xf32> to vector<8x64xf32>
    %5 = arith.addf %2, %4 : vector<8x64xf32>
    %cst_5 = arith.constant 0.000000e+00 : f32
    %6 = vector.broadcast %cst_5 : f32 to vector<8x64xf32>
    %7 = arith.maximumf %5, %6 : vector<8x64xf32>
    %c0_6 = arith.constant 0 : index
    %c0_7 = arith.constant 0 : index
    %8 = vector.load %arg7[%c0_6, %c0_7] : memref<64x1024xf32, #tpu.memory_space<vmem>>, vector<64x1024xf32>
    %cst_8 = arith.constant dense<0.000000e+00> : vector<8x1024xf32>
    %9 = tpu.matmul %7, %8, %cst_8 {dimension_numbers = #tpu.dot_dimension_numbers<[1], [0], [0], [1], [0, 0, 1, 1], [], []>} : vector<8x64xf32>, vector<64x1024xf32>, vector<8x1024xf32> -> vector<8x1024xf32>
    %c0_9 = arith.constant 0 : index
    %c0_10 = arith.constant 0 : index
    %10 = vector.load %arg8[%c0_9, %c0_10] : memref<1x1024xf32, #tpu.memory_space<vmem>>, vector<1x1024xf32>
    %11 = vector.broadcast %10 : vector<1x1024xf32> to vector<8x1024xf32>
    %12 = arith.addf %9, %11 : vector<8x1024xf32>
    %13 = vector.shape_cast %12 : vector<8x1024xf32> to vector<8x8x128xf32>
    %cst_11 = arith.constant dense<0xFF800000> : vector<8x8xf32>
    %14 = vector.multi_reduction <maximumf>, %13, %cst_11 [2] : vector<8x8x128xf32> to vector<8x8xf32>
    %15 = vector.shape_cast %14 : vector<8x8xf32> to vector<8x8x1xf32>
    %16 = vector.broadcast %15 : vector<8x8x1xf32> to vector<8x8x128xf32>
    %17 = arith.subf %13, %16 : vector<8x8x128xf32>
    %18 = math.exp %17 : vector<8x8x128xf32>
    %cst_12 = arith.constant dense<0.000000e+00> : vector<8x8xf32>
    %19 = vector.multi_reduction <add>, %18, %cst_12 [2] : vector<8x8x128xf32> to vector<8x8xf32>
    %20 = vector.shape_cast %19 : vector<8x8xf32> to vector<8x8x1xf32>
    %21 = tpu.reciprocal %20 {approx = true} : vector<8x8x1xf32> -> vector<8x8x1xf32>
    %22 = arith.mulf %20, %21 : vector<8x8x1xf32>
    %cst_13 = arith.constant 2.000000e+00 : f32
    %23 = vector.broadcast %cst_13 : f32 to vector<8x8x1xf32>
    %24 = arith.subf %23, %22 : vector<8x8x1xf32>
    %25 = arith.mulf %21, %24 : vector<8x8x1xf32>
    %26 = tpu.iota {dimensions = array<i32: 2>} : vector<8x8x128xi32>
    %c0_14 = arith.constant 0 : index
    %c0_15 = arith.constant 0 : index
    %27 = vector.load %arg2[%c0_14, %c0_15] : memref<8x8xi32, #tpu.memory_space<vmem>>, vector<8x8xi32>
    %28 = vector.shape_cast %27 : vector<8x8xi32> to vector<8x8x1xi32>
    %29 = vector.broadcast %28 : vector<8x8x1xi32> to vector<8x8x128xi32>
    %30 = arith.cmpi eq, %26, %29 : vector<8x8x128xi32>
    %cst_16 = arith.constant 0.000000e+00 : f32
    %31 = vector.broadcast %cst_16 : f32 to vector<8x8x128xf32>
    %32 = arith.select %30, %18, %31 : vector<8x8x128xi1>, vector<8x8x128xf32>
    %cst_17 = arith.constant dense<0.000000e+00> : vector<8x8xf32>
    %33 = vector.multi_reduction <add>, %32, %cst_17 [2] : vector<8x8x128xf32> to vector<8x8xf32>
    %34 = vector.shape_cast %33 : vector<8x8xf32> to vector<8x8x1xf32>
    %c0_18 = arith.constant 0 : index
    %c0_19 = arith.constant 0 : index
    %35 = vector.load %arg3[%c0_18, %c0_19] : memref<8x1xf32, #tpu.memory_space<vmem>>, vector<8x1xf32>
    %36 = vector.shape_cast %35 : vector<8x1xf32> to vector<8x1x1xf32>
    %37 = vector.broadcast %36 : vector<8x1x1xf32> to vector<8x8x1xf32>
    %38 = arith.mulf %37, %25 : vector<8x8x1xf32>
    %c0_20 = arith.constant 0 : index
    %c0_21 = arith.constant 0 : index
    %39 = vector.load %arg4[%c0_20, %c0_21] : memref<8x1xf32, #tpu.memory_space<vmem>>, vector<8x1xf32>
    %40 = vector.shape_cast %39 : vector<8x1xf32> to vector<8x1x1xf32>
    %41 = vector.broadcast %40 : vector<8x1x1xf32> to vector<8x8x1xf32>
    %42 = arith.mulf %41, %25 : vector<8x8x1xf32>
    %43 = vector.broadcast %38 : vector<8x8x1xf32> to vector<8x8x128xf32>
    %44 = arith.mulf %43, %18 : vector<8x8x128xf32>
    %cst_22 = arith.constant 1.000000e+00 : f32
    %45 = vector.broadcast %cst_22 : f32 to vector<8x8x128xf32>
    %46 = arith.addf %45, %44 : vector<8x8x128xf32>
    %47 = arith.mulf %42, %34 : vector<8x8x1xf32>
    %48 = vector.broadcast %47 : vector<8x8x1xf32> to vector<8x8x128xf32>
    %49 = arith.addf %46, %48 : vector<8x8x128xf32>
    %c0_23 = arith.constant 0 : index
    %c0_24 = arith.constant 0 : index
    %c0_25 = arith.constant 0 : index
    %50 = vector.load %arg9[%c0_23, %c0_24, %c0_25] : memref<8x8x128xf32, #tpu.memory_space<vmem>>, vector<8x8x128xf32>
    tpu.vector_store %arg9[%c0_23, %c0_24, %c0_25], %49 {strides = array<i32>} : memref<8x8x128xf32, #tpu.memory_space<vmem>>, vector<8x8x128xf32>,
    return
  }
  func.func @transform_0(%arg0: i32) -> (i32, i32) {
    %c0_i32 = arith.constant 0 : i32
    %c0_i32_0 = arith.constant 0 : i32
    return %arg0, %c0_i32 : i32, i32
  }
  func.func @transform_1(%arg0: i32) -> (i32, i32) {
    %c0_i32 = arith.constant 0 : i32
    %c0_i32_0 = arith.constant 0 : i32
    return %arg0, %c0_i32 : i32, i32
  }
  func.func @transform_2(%arg0: i32) -> (i32, i32) {
    %c0_i32 = arith.constant 0 : i32
    %c0_i32_0 = arith.constant 0 : i32
    return %arg0, %c0_i32 : i32, i32
  }
  func.func @transform_3(%arg0: i32) -> (i32, i32) {
    %c0_i32 = arith.constant 0 : i32
    %c0_i32_0 = arith.constant 0 : i32
    return %arg0, %c0_i32 : i32, i32
  }
  func.func @transform_4(%arg0: i32) -> (i32, i32) {
    %c0_i32 = arith.constant 0 : i32
    %c0_i32_0 = arith.constant 0 : i32
    %c0_i32_1 = arith.constant 0 : i32
    return %c0_i32, %c0_i32_0 : i32, i32
  }
  func.func @transform_5(%arg0: i32) -> (i32, i32) {
    %c0_i32 = arith.constant 0 : i32
    %c0_i32_0 = arith.constant 0 : i32
    %c0_i32_1 = arith.constant 0 : i32
    return %c0_i32, %c0_i32_0 : i32, i32
  }
  func.func @transform_6(%arg0: i32) -> (i32, i32) {
    %c0_i32 = arith.constant 0 : i32
    %c0_i32_0 = arith.constant 0 : i32
    %c0_i32_1 = arith.constant 0 : i32
    return %c0_i32, %c0_i32_0 : i32, i32
  }
  func.func @transform_7(%arg0: i32) -> (i32, i32) {
    %c0_i32 = arith.constant 0 : i32
    %c0_i32_0 = arith.constant 0 : i32
    %c0_i32_1 = arith.constant 0 : i32
    return %c0_i32, %c0_i32_0 : i32, i32
  }
  func.func @transform_8(%arg0: i32) -> (i32, i32, i32) {
    %c0_i32 = arith.constant 0 : i32
    %c0_i32_0 = arith.constant 0 : i32
    %c0_i32_1 = arith.constant 0 : i32
    return %arg0, %c0_i32, %c0_i32_0 : i32, i32, i32
  }
}

</mosaic_0001>

<bundles_post_ra>
// kernel: classification_forward_rate.1
= control target key start
LH: loop header
LB: loop body
LE: loop exit
PB: predicated region body
PF: predicated region fallthrough
CT: control target
= control target key end

     0   :  { %13 = vsyncpa [#allocation3], 0  ;;  %s889_s30 = smov [#allocation2]   ;;  %s890_s10 = smov 1024   ;;  %s1111_s0 = inlined_call_operand.vmem [shape: f32[8,40], index: 0, kind: input, shape index: {}]   ;;  %s1112_s1 = inlined_call_operand.vmem [shape: s32[8,8], index: 1, kind: input, shape index: {}]   ;;  %s1113_s2 = inlined_call_operand.vmem [shape: f32[8,1], index: 2, kind: input, shape index: {}]   ;;  %s1114_s3 = inlined_call_operand.vmem [shape: f32[8,1], index: 3, kind: input, shape index: {}]   ;;  %s1115_s4 = inlined_call_operand.vmem [shape: f32[40,64], index: 4, kind: input, shape index: {}]   ;;  %s1116_s5 = inlined_call_operand.vmem [shape: f32[1,64], index: 5, kind: input, shape index: {}]   ;;  %s1117_s6 = inlined_call_operand.hbm [shape: f32[64,1024], index: 6, kind: input, shape index: {}]   ;;  %s1118_s7 = inlined_call_operand.vmem [shape: f32[1,1024], index: 7, kind: input, shape index: {}]   ;;  %s1119_s8 = inlined_call_operand.vmem [shape: f32[8,8,128], index: 8, kind: output, shape index: {}]  }
   0x1   :  { %s30_s29 = sshll.u32 %s1117_s6, 4  ;;  %s32_s9 = sshll.u32 %s889_s30, 4  ;;  %s31_s29 = int_to_ptr.hbm [resolvable:$true] %s30_s29  ;;  %s33_s9 = int_to_ptr.vmem [resolvable:$true] %s32_s9 }
   0x2   :  { %s891_s11 = smov 64  }
   0x3   :  { %38 = dma.hbm_to_vmem [thread:$0]  %s31_s29, 8192, %s33_s9, [#allocation3], %s890_s10, %s890_s10, %s891_s11  }
   0x4   :  { %887 = dma.done.wait [#allocation3], 8192  }
   0x5   :  { %888 = vsyncadd [#allocation3], 4294959104  ;;  %v50_v0 = vld [vmem:[%s1115_s4 + $0x20] sm:$0xff]  ;;  %v49_v1 = vld [vmem:[%s1115_s4 + $0x18] sm:$0xff]  ;;  %vm55_vm0 = vcmask 326656   ;;  %vm162_vm1 = vcmask 523264  }
   0x6   :  { %70 = vmatpush.msra.mxu0 %v50_v0  ;;  %v48_v2 = vld [vmem:[%s1115_s4 + $0x10] sm:$0xff]  ;;  %v136_v3 = vld [vmem:[#allocation2 + $0x1c0] sm:$0xff]  ;;  %v137_v4 = vld [vmem:[#allocation2 + $0x1c8] sm:$0xff]  ;;  %vm327_vm2 = vcmask 1047556  }
   0x7   :  { %v138_v5 = vld [vmem:[#allocation2 + $0x1d0] sm:$0xff]  ;;  %174 = vmatpush.msra.mxu1 %v136_v3  ;;  %v128_v6 = vld [vmem:[#allocation2 + $0x180] sm:$0xff]  ;;  %v129_v7 = vld [vmem:[#allocation2 + $0x188] sm:$0xff]  ;;  %194 = vmatpush.msra.mxu2 %v137_v4 }
   0x8   :  { %71 = vmatpush.msra.mxu0 %v49_v1  ;;  %v47_v8 = vld [vmem:[%s1115_s4 + $0x8] sm:$0xff]  ;;  %214 = vmatpush.msra.mxu3 %v138_v5  ;;  %v130_v9 = vld [vmem:[#allocation2 + $0x190] sm:$0xff]  ;;  %v120_v10 = vld [vmem:[#allocation2 + $0x140] sm:$0xff] }
   0x9   :  { %175 = vmatpush.msra.mxu1 %v128_v6  ;;  %v121_v11 = vld [vmem:[#allocation2 + $0x148] sm:$0xff]  ;;  %v122_v12 = vld [vmem:[#allocation2 + $0x150] sm:$0xff]  ;;  %v46_v13 = vld [vmem:[%s1115_s4] sm:$0xff]  ;;  %195 = vmatpush.msra.mxu2 %v129_v7  ;;  %v527_v6 = vlaneseq }
   0xa   :  { %72 = vmatpush.msra.mxu0 %v48_v2  ;;  %215 = vmatpush.msra.mxu3 %v130_v9  ;;  %v112_v14 = vld [vmem:[#allocation2 + $0x100] sm:$0xff]  ;;  %v113_v16 = vld [vmem:[#allocation2 + $0x108] sm:$0xff]  ;;  %v139_v17 = vld [vmem:[#allocation2 + $0x1d8] sm:$0xff] }
   0xb   :  { %v45_v15 = vld [vmem:[%s1111_s0] sm:$0xff]  ;;  %176 = vmatpush.msra.mxu1 %v120_v10  ;;  %196 = vmatpush.msra.mxu2 %v121_v11  ;;  %v114_v18 = vld [vmem:[#allocation2 + $0x110] sm:$0xff]  ;;  %v105_v20 = vld [vmem:[#allocation2 + $0xc8] sm:$0xff]  ;;  %v532_v7 = vshrl.u32 %v527_v6, 7 }
   0xc   :  { %73 = vmatpush.msra.mxu0 %v47_v8  ;;  %216 = vmatpush.msra.mxu3 %v122_v12  ;;  %v104_v19 = vld [vmem:[#allocation2 + $0xc0] sm:$0xff]  ;;  %v131_v21 = vld [vmem:[#allocation2 + $0x198] sm:$0xff]  ;;  %v106_v22 = vld [vmem:[#allocation2 + $0xd0] sm:$0xff] }
   0xd   :  { %177 = vmatpush.msra.mxu1 %v112_v14  ;;  %197 = vmatpush.msra.mxu2 %v113_v16  ;;  %v96_v23 = vld [vmem:[#allocation2 + $0x80] sm:$0xff]  ;;  %v97_v24 = vld [vmem:[#allocation2 + $0x88] sm:$0xff]  ;;  %v123_v25 = vld [vmem:[#allocation2 + $0x158] sm:$0xff] }
   0xe   :  { %74 = vmatpush.msra.mxu0 %v46_v13  ;;  %217 = vmatpush.msra.mxu3 %v114_v18  ;;  %v98_v26 = vld [vmem:[#allocation2 + $0x90] sm:$0xff]  ;;  %v88_v27 = vld [vmem:[#allocation2 + $0x40] sm:$0xff]  ;;  %v89_v28 = vld [vmem:[#allocation2 + $0x48] sm:$0xff] }
   0xf   :  { %809 = vmatmul.msk.f32.vlgmr.msra.gmra.mxu0 %vm55_vm0, %v45_v15  ;;  %178 = vmatpush.msra.mxu1 %v104_v19  ;;  %v115_v29 = vld [vmem:[#allocation2 + $0x118] sm:$0xff]  ;;  %v90_v30 = vld [vmem:[#allocation2 + $0x50] sm:$0xff]  ;;  %v80_v31 = vld [vmem:[#allocation2] sm:$0xff] }
  0x10   :  { %234 = vmatpush.msrb.mxu0 %v139_v17  ;;  %198 = vmatpush.msra.mxu2 %v105_v20  ;;  %v81_v32 = vld [vmem:[#allocation2 + $0x8] sm:$0xff]  ;;  %v107_v33 = vld [vmem:[#allocation2 + $0xd8] sm:$0xff]  ;;  %v82_v34 = vld [vmem:[#allocation2 + $0x10] sm:$0xff]  ;;  %v892_v20 = vmov 1983009808  }
  0x11   :  { %218 = vmatpush.msra.mxu3 %v106_v22  ;;  %179 = vmatpush.msra.mxu1 %v96_v23  ;;  %v140_v35 = vld [vmem:[#allocation2 + $0x1e0] sm:$0xff]  ;;  %v141_v36 = vld [vmem:[#allocation2 + $0x1e8] sm:$0xff]  ;;  %v99_v37 = vld [vmem:[#allocation2 + $0x98] sm:$0xff] }
  0x12   :  { %235 = vmatpush.msrb.mxu0 %v131_v21  ;;  %199 = vmatpush.msra.mxu2 %v97_v24  ;;  %v142_v38 = vld [vmem:[#allocation2 + $0x1f0] sm:$0xff]  ;;  %v91_v39 = vld [vmem:[#allocation2 + $0x58] sm:$0xff]  ;;  %v132_v42 = vld [vmem:[#allocation2 + $0x1a0] sm:$0xff]  ;;  %v332_v21 = vunpack.c.l.s4 %v892_v20 }
  0x13   :  { %219 = vmatpush.msra.mxu3 %v98_v26  ;;  %180 = vmatpush.msra.mxu1 %v88_v27  ;;  %v83_v40 = vld [vmem:[#allocation2 + $0x18] sm:$0xff]  ;;  %v133_v43 = vld [vmem:[#allocation2 + $0x1a8] sm:$0xff]  ;;  %v134_v44 = vld [vmem:[#allocation2 + $0x1b0] sm:$0xff] }
  0x14   :  { %236 = vmatpush.msrb.mxu0 %v123_v25  ;;  %200 = vmatpush.msra.mxu2 %v89_v28  ;;  %v143_v41 = vld [vmem:[#allocation2 + $0x1f8] sm:$0xff]  ;;  %v124_v46 = vld [vmem:[#allocation2 + $0x160] sm:$0xff]  ;;  %v125_v47 = vld [vmem:[#allocation2 + $0x168] sm:$0xff]  ;;  %v333_v27 = vunpack.c.0.s8 %v332_v21 }
  0x15   :  { %220 = vmatpush.msra.mxu3 %v90_v30  ;;  %181 = vmatpush.msra.mxu1 %v80_v31  ;;  %v135_v45 = vld [vmem:[#allocation2 + $0x1b8] sm:$0xff]  ;;  %v126_v48 = vld [vmem:[#allocation2 + $0x170] sm:$0xff]  ;;  %v116_v50 = vld [vmem:[#allocation2 + $0x120] sm:$0xff] }
  0x16   :  { %237 = vmatpush.msrb.mxu0 %v115_v29  ;;  %201 = vmatpush.msra.mxu2 %v81_v32  ;;  %v127_v49 = vld [vmem:[#allocation2 + $0x178] sm:$0xff]  ;;  %v117_v51 = vld [vmem:[#allocation2 + $0x128] sm:$0xff]  ;;  %v118_v52 = vld [vmem:[#allocation2 + $0x130] sm:$0xff] }
  0x17   :  { %221 = vmatpush.msra.mxu3 %v82_v34  ;;  %254 = vmatpush.msrb.mxu1 %v140_v35  ;;  %v119_v53 = vld [vmem:[#allocation2 + $0x138] sm:$0xff]  ;;  %v108_v54 = vld [vmem:[#allocation2 + $0xe0] sm:$0xff]  ;;  %v109_v55 = vld [vmem:[#allocation2 + $0xe8] sm:$0xff] }
  0x18   :  { %238 = vmatpush.msrb.mxu0 %v107_v33  ;;  %274 = vmatpush.msrb.mxu2 %v141_v36  ;;  %v110_v56 = vld [vmem:[#allocation2 + $0xf0] sm:$0xff]  ;;  %v111_v57 = vld [vmem:[#allocation2 + $0xf8] sm:$0xff]  ;;  %v100_v58 = vld [vmem:[#allocation2 + $0xa0] sm:$0xff] }
  0x19   :  { %294 = vmatpush.msrb.mxu3 %v142_v38  ;;  %255 = vmatpush.msrb.mxu1 %v132_v42  ;;  %v101_v59 = vld [vmem:[#allocation2 + $0xa8] sm:$0xff]  ;;  %v102_v60 = vld [vmem:[#allocation2 + $0xb0] sm:$0xff]  ;;  %v103_v61 = vld [vmem:[#allocation2 + $0xb8] sm:$0xff]  ;;  %v893_v42 = vmov 1934713408  }
  0x1a   :  { %239 = vmatpush.msrb.mxu0 %v99_v37  ;;  %275 = vmatpush.msrb.mxu2 %v133_v43  ;;  %v92_v62 = vld [vmem:[#allocation2 + $0x60] sm:$0xff]  ;;  %v93_v63 = vld [vmem:[#allocation2 + $0x68] sm:$0xff]  ;;  %v94_v0 = vld [vmem:[#allocation2 + $0x70] sm:$0xff]  ;;  %v380_v43 = vunpack.c.l.s4 %v893_v42 }
  0x1b   :  { %295 = vmatpush.msrb.mxu3 %v134_v44  ;;  %256 = vmatpush.msrb.mxu1 %v124_v46  ;;  %v95_v1 = vld [vmem:[#allocation2 + $0x78] sm:$0xff]  ;;  %v84_v2 = vld [vmem:[#allocation2 + $0x20] sm:$0xff]  ;;  %v85_v3 = vld [vmem:[#allocation2 + $0x28] sm:$0xff] }
  0x1c   :  { %240 = vmatpush.msrb.mxu0 %v91_v39  ;;  %276 = vmatpush.msrb.mxu2 %v125_v47  ;;  %v86_v4 = vld [vmem:[#allocation2 + $0x30] sm:$0xff]  ;;  %v87_v5 = vld [vmem:[#allocation2 + $0x38] sm:$0xff]  ;;  %v965_v8 = vld [vmem:[%s1112_s1] sm:$0xff] }
  0x1d   :  { %296 = vmatpush.msrb.mxu3 %v126_v48  ;;  %257 = vmatpush.msrb.mxu1 %v116_v50  ;;  %v530_v9 = vperm.slane %v965_v8, 0  ;;  %v537_v10 = vperm.slane %v965_v8, 1  ;;  %v830_v11 = vld [vmem:[%s1116_s5] ss:$0 sm:$0xff] }
  0x1e   :  { %241 = vmatpush.msrb.mxu0 %v83_v40  ;;  %277 = vmatpush.msrb.mxu2 %v117_v51  ;;  %v144_v15 = vld [vmem:[%s1118_s7] sm:$0xff] }
  0x1f   :  { %297 = vmatpush.msrb.mxu3 %v118_v52  ;;  %258 = vmatpush.msrb.mxu1 %v108_v54  ;;  %v149_v16 = vperm.slane %v144_v15, 3  ;;  %v146_v17 = vperm.slane %v144_v15, 0  ;;  %v147_v23 = vperm.slane %v144_v15, 1  ;;  %v148_v25 = vperm.slane %v144_v15, 2 }
  0x20   :  { %314 = vmatpush.msra.mxu0 %v143_v41  ;;  %278 = vmatpush.msrb.mxu2 %v109_v55  ;;  %v153_v31 = vperm.slane %v144_v15, 7  ;;  %v150_v34 = vperm.slane %v144_v15, 4  ;;  %v151_v47 = vperm.slane %v144_v15, 5  ;;  %v152_v51 = vperm.slane %v144_v15, 6 }
  0x21   :  { %298 = vmatpush.msrb.mxu3 %v110_v56  ;;  %259 = vmatpush.msrb.mxu1 %v100_v58 }
  0x22   :  { %315 = vmatpush.msra.mxu0 %v135_v45  ;;  %279 = vmatpush.msrb.mxu2 %v101_v59 }
  0x23   :  { %299 = vmatpush.msrb.mxu3 %v102_v60  ;;  %260 = vmatpush.msrb.mxu1 %v92_v62  ;;  %v381_v60 = vunpack.c.0.s8 %v380_v43 }
  0x24   :  { %316 = vmatpush.msra.mxu0 %v127_v49  ;;  %280 = vmatpush.msrb.mxu2 %v93_v63 }
  0x25   :  { %300 = vmatpush.msrb.mxu3 %v94_v0  ;;  %261 = vmatpush.msrb.mxu1 %v84_v2 }
  0x26   :  { %317 = vmatpush.msra.mxu0 %v119_v53  ;;  %281 = vmatpush.msrb.mxu2 %v85_v3 }
  0x27   :  { %301 = vmatpush.msrb.mxu3 %v86_v4  ;;  %824 = vset.pattern.permute.xlu1 %v532_v7 }
  0x28   :  { %318 = vmatpush.msra.mxu0 %v111_v57  ;;  %825 = vset.pattern.permute.xlu2 %v532_v7 }
  0x29   :  { %826 = vset.pattern.permute.xlu0 %v532_v7 }
  0x2a   :  { %319 = vmatpush.msra.mxu0 %v103_v61 }
  0x2c   :  { %320 = vmatpush.msra.mxu0 %v95_v1 }
  0x2e   :  { %321 = vmatpush.msra.mxu0 %v87_v5 }
  0x2f   :  { %535 = vperm.xlu1 %824, %v530_v9  }
  0x30   :  { %542 = vperm.xlu2 %825, %v537_v10  }
  0x8c   :  { %v76_v12 = vpop.f32.mrf.mxu0 }
  0x8d   :  { %v77_v13 = vadd.f32 %v830_v11, %v76_v12 }
  0x8f   :  { %v79_v14 = vmax.f32 %v77_v13, 0.0 }
  0x91   :  { %810 = vmatmul.msk.f32.vlgmr.msra.gmra.mxu1 %vm162_vm1, %v79_v14  ;;  %811 = vmatmul.msk.f32.vlgmr.msra.gmra.mxu2 %vm162_vm1, %v79_v14 }
  0x92   :  { %812 = vmatmul.msk.f32.vlgmr.msra.gmra.mxu3 %vm162_vm1, %v79_v14  ;;  %813 = vmatmul.msk.f32.vlgmr.msrb.gmra.mxu0 %vm162_vm1, %v79_v14 }
  0x99   :  { %814 = vmatmul.msk.f32.vlgmr.msrb.gmra.mxu1 %vm162_vm1, %v79_v14  ;;  %815 = vmatmul.msk.f32.vlgmr.msrb.gmra.mxu2 %vm162_vm1, %v79_v14 }
  0x9a   :  { %816 = vmatmul.msk.f32.vlgmr.msrb.gmra.mxu3 %vm162_vm1, %v79_v14  ;;  %817 = vmatmul.msk.f32.vlgmr.msra.gmra.mxu0 %vm162_vm1, %v79_v14 }
 0x10e   :  { %v183_v18 = vpop.f32.mrf.mxu1 }
 0x10f   :  { %v243_v19 = vpop.f32.mrf.mxu0  ;;  %v184_v24 = vadd.f32 %v183_v18, %v146_v17 }
 0x110   :  { %v244_v22 = vadd.f32 %v243_v19, %v149_v16 }
 0x111   :  { %v329_v32 = vrot.slane %v184_v24, 4 }
 0x112   :  { %v339_v28 = vrot.slane %v244_v22, 4 }
 0x114   :  { %v203_v26 = vpop.f32.mrf.mxu2 }
 0x115   :  { %v204_v29 = vadd.f32 %v203_v26, %v147_v23  ;;  %v223_v30 = vpop.f32.mrf.mxu3 }
 0x116   :  { %v224_v33 = vadd.f32 %v223_v30, %v148_v25  ;;  %v263_v37 = vpop.f32.mrf.mxu1 }
 0x117   :  { %v340_v35 = vsel %vm327_vm2, %v339_v28, %v204_v29  ;;  %v341_v36 = vrot.slane %v204_v29, 4  ;;  %v323_v38 = vpop.f32.mrf.mxu0  ;;  %v264_v50 = vadd.f32 %v263_v37, %v150_v34 }
 0x118   :  { %v346_v39 = vperm.slane %v340_v35, %v333_v27  ;;  %v326_v40 = vrot.slane %v224_v33, 4  ;;  %v330_v41 = vsel %vm327_vm2, %v224_v33, %v329_v32  ;;  %v324_v46 = vadd.f32 %v323_v38, %v153_v31 }
 0x119   :  { %v342_v44 = vsel %vm327_vm2, %v244_v22, %v341_v36  ;;  %v338_v45 = vperm.slane %v330_v41, %v333_v27  ;;  %v353_v61 = vrot.slane %v264_v50, 4 }
 0x11a   :  { %v350_v48 = vperm.slane %v342_v44, %v333_v27  ;;  %v328_v49 = vsel %vm327_vm2, %v326_v40, %v184_v24  ;;  %v375_v52 = vrot.slane %v346_v39, 4  ;;  %v363_v57 = vrot.slane %v324_v46, 4 }
 0x11b   :  { %v334_v53 = vperm.slane %v328_v49, %v333_v27  ;;  %v389_v54 = vrot.slane %v338_v45, 4  ;;  %v558_v49 = vperm.slane %v965_v8, 4 }
 0x11c   :  { %v387_v55 = vrot.slane %v350_v48, 4  ;;  %v283_v56 = vpop.f32.mrf.mxu2 }
 0x11d   :  { %v284_v58 = vadd.f32 %v283_v56, %v151_v47  ;;  %v303_v59 = vpop.f32.mrf.mxu3  ;;  %v390_v63 = vsel %vm327_vm2, %v350_v48, %v389_v54  ;;  %v376_v2 = vsel %vm327_vm2, %v375_v52, %v334_v53  ;;  %v377_v16 = vrot.slane %v334_v53, 4  ;;  %v536_v54 = vpop.permute.xlu1 %535 }
 0x11e   :  { %v304_v62 = vadd.f32 %v303_v59, %v152_v51  ;;  %v388_v7 = vsel %vm327_vm2, %v387_v55, %v338_v45  ;;  %v398_v11 = vperm.slane %v390_v63, %v381_v60  ;;  %v382_v15 = vperm.slane %v376_v2, %v381_v60  ;;  %v543_v55 = vpop.permute.xlu2 %542 }
 0x11f   :  { %v364_v0 = vsel %vm327_vm2, %v363_v57, %v284_v58  ;;  %v365_v1 = vrot.slane %v284_v58, 4  ;;  %v394_v19 = vperm.slane %v388_v7, %v381_v60  ;;  %v378_v32 = vsel %vm327_vm2, %v346_v39, %v377_v16 }
 0x120   :  { %v370_v3 = vperm.slane %v364_v0, %v333_v27  ;;  %v351_v4 = vrot.slane %v304_v62, 4  ;;  %v354_v5 = vsel %vm327_vm2, %v304_v62, %v353_v61  ;;  %v437_v23 = vrot.slane %v398_v11, 4 }
 0x121   :  { %v366_v9 = vsel %vm327_vm2, %v324_v46, %v365_v1  ;;  %v362_v10 = vperm.slane %v354_v5, %v333_v27  ;;  %v425_v28 = vrot.slane %v382_v15, 4  ;;  %v433_v31 = vrot.slane %v394_v19, 4 }
 0x122   :  { %v374_v12 = vperm.slane %v366_v9, %v333_v27  ;;  %v399_v13 = vrot.slane %v370_v3, 4  ;;  %v352_v14 = vsel %vm327_vm2, %v351_v4, %v264_v50  ;;  %v386_v38 = vperm.slane %v378_v32, %v381_v60 }
 0x123   :  { %v358_v17 = vperm.slane %v352_v14, %v333_v27  ;;  %v413_v18 = vrot.slane %v362_v10, 4  ;;  %v551_v48 = vperm.slane %v965_v8, 3  ;;  %v565_v50 = vperm.slane %v965_v8, 5 }
 0x124   :  { %v411_v20 = vrot.slane %v374_v12, 4  ;;  %v429_v43 = vrot.slane %v386_v38, 4  ;;  %v572_v51 = vperm.slane %v965_v8, 6  ;;  %v579_v52 = vperm.slane %v965_v8, 7 }
 0x125   :  { %v401_v21 = vrot.slane %v358_v17, 4  ;;  %v414_v22 = vsel %vm327_vm2, %v374_v12, %v413_v18  ;;  %v400_v24 = vsel %vm327_vm2, %v399_v13, %v358_v17  ;;  %v544_v53 = vperm.slane %v965_v8, 2 }
 0x126   :  { %v422_v25 = vperm.slane %v414_v22, %v381_v60  ;;  %v406_v26 = vperm.slane %v400_v24, %v381_v60  ;;  %v412_v29 = vsel %vm327_vm2, %v411_v20, %v362_v10  ;;  %v528_v12 = vand.u32 127, %v527_v6 }
 0x127   :  { %v418_v30 = vperm.slane %v412_v29, %v381_v60  ;;  %v402_v27 = vsel %vm327_vm2, %v370_v3, %v401_v21 }
 0x128   :  { %v438_v33 = vsel %vm327_vm2, %v422_v25, %v437_v23  ;;  %v426_v34 = vsel %vm327_vm2, %v406_v26, %v425_v28  ;;  %v410_v35 = vperm.slane %v402_v27, %v381_v60  ;;  %v423_v42 = vrot.slane %v406_v26, 4 }
 0x129   :  { %453 = vmax.xlane.f32.xlu1 %v438_v33  ;;  %441 = vmax.xlane.f32.xlu0 %v426_v34  ;;  %v434_v36 = vsel %vm327_vm2, %v418_v30, %v433_v31  ;;  %v431_v37 = vrot.slane %v418_v30, 4  ;;  %v435_v46 = vrot.slane %v422_v25, 4  ;;  %vm586_vm3 = vcmp.eq.s32.totalorder %v528_v12, %v536_v54 }
 0x12a   :  { %449 = vmax.xlane.f32.xlu2 %v434_v36  ;;  %v427_v41 = vrot.slane %v410_v35, 4  ;;  %v430_v44 = vsel %vm327_vm2, %v410_v35, %v429_v43  ;;  %v424_v45 = vsel %vm327_vm2, %v423_v42, %v382_v15  ;;  %vm587_vm5 = vcmp.eq.s32.totalorder %v528_v12, %v543_v55  ;;  %v1053_v42 = vld [vmem:[%s1113_s2] sm:$0xff] }
 0x12b   :  { %v995_v40 = vsel %vm327_vm2, %v431_v37, %v394_v19  ;;  %v1003_v47 = vsel %vm327_vm2, %v435_v46, %v398_v11 }
 0x12c   :  { %v998_v39 = vsel %vm327_vm2, %v427_v41, %v386_v38 }
 0x131   :  { %445 = vmax.xlane.f32.xlu1 %v430_v44  ;;  %439 = vmax.xlane.f32.xlu0 %v424_v45 }
 0x139   :  { %451 = vmax.xlane.f32.xlu0 %v1003_v47 }
 0x142   :  { %556 = vperm.xlu2 %825, %v551_v48  }
 0x14a   :  { %563 = vperm.xlu1 %824, %v558_v49   ;;  %570 = vperm.xlu2 %825, %v565_v50   ;;  %v1059_v49 = vld [vmem:[%s1114_s3] sm:$0xff] }
 0x14d   :  { %549 = vperm.xlu0 %826, %v544_v53  }
 0x152   :  { %577 = vperm.xlu1 %824, %v572_v51   ;;  %584 = vperm.xlu2 %825, %v579_v52   ;;  %v659_v51 = vrot.slane %v1059_v49, 7  ;;  %v626_v52 = vrot.slane %v1053_v42, 7 }
 0x17b   :  { %447 = vmax.xlane.f32.xlu2 %v995_v40 }
 0x17c   :  { %443 = vmax.xlane.f32.xlu1 %v998_v39 }
 0x19c   :  { %v454_v56 = vpop.xlane.xlu1 %453  ;;  %v442_v57 = vpop.xlane.xlu0 %441 }
 0x19d   :  { %v456_v58 = vsub.f32 %v426_v34, %v442_v57  ;;  %v450_v59 = vpop.xlane.xlu2 %449  ;;  %v462_v63 = vsub.f32 %v438_v33, %v454_v56  ;;  %v667_v57 = vperm.slane %v659_v51, 0 }
 0x19e   :  { %v460_v60 = vsub.f32 %v434_v36, %v450_v59 }
 0x19f   :  { %v465_v61 = vmul.f32 1.442695, %v456_v58  ;;  %v477_v1 = vmul.f32 1.442695, %v462_v63  ;;  %v634_v58 = vperm.slane %v626_v52, 0 }
 0x1a0   :  { %v473_v62 = vmul.f32 1.442695, %v460_v60 }
 0x1a1   :  { %831 = vpow2.f32 %v465_v61 }
 0x1a2   :  { %833 = vpow2.f32 %v473_v62 }
 0x1a3   :  { %835 = vpow2.f32 %v477_v1 }
 0x1a4   :  { %v440_v0 = vpop.xlane.xlu0 %439  ;;  %v446_v8 = vpop.xlane.xlu1 %445 }
 0x1a5   :  { %v455_v2 = vsub.f32 %v424_v45, %v440_v0  ;;  %v557_v3 = vpop.permute.xlu2 %556  ;;  %v458_v7 = vsub.f32 %v430_v44, %v446_v8 }
 0x1a6   :  { %vm589_vm6 = vcmp.eq.s32.totalorder %v528_v12, %v557_v3 }
 0x1a7   :  { %v463_v4 = vmul.f32 1.442695, %v455_v2  ;;  %v1014_v5 = vpop.eup %831  ;;  %v469_v10 = vmul.f32 1.442695, %v458_v7 }
 0x1a8   :  { %v1016_v9 = vpop.eup %833  ;;  %481 = vadd.xlane.f32.xlu0 %v1014_v5  ;;  %v595_v20 = vsel %vm587_vm5, %v1014_v5, 0.0 }
 0x1a9   :  { %837 = vpow2.f32 %v463_v4  ;;  %489 = vadd.xlane.f32.xlu1 %v1016_v9  ;;  %v1021_v13 = vpop.eup %835  ;;  %v627_v4 = vperm.slane %v1053_v42, 0 }
 0x1aa   :  { %839 = vpow2.f32 %v469_v10 }
 0x1ac   :  { %v452_v16 = vpop.xlane.xlu0 %451 }
 0x1ad   :  { %v571_v11 = vpop.permute.xlu2 %570  ;;  %v461_v19 = vsub.f32 %v1003_v47, %v452_v16 }
 0x1ae   :  { %vm591_vm7 = vcmp.eq.s32.totalorder %v528_v12, %v571_v11 }
 0x1af   :  { %v1023_v14 = vpop.eup %837  ;;  %v475_v22 = vmul.f32 1.442695, %v461_v19  ;;  %v599_v24 = vsel %vm591_vm7, %v1016_v9, 0.0 }
 0x1b0   :  { %493 = vadd.xlane.f32.xlu0 %v1021_v13  ;;  %v594_v15 = vsel %vm586_vm3, %v1023_v14, 0.0  ;;  %v1027_v18 = vpop.eup %839 }
 0x1b1   :  { %602 = vadd.xlane.f32.xlu1 %v594_v15  ;;  %v597_v21 = vsel %vm589_vm6, %v1027_v18, 0.0  ;;  %841 = vpow2.f32 %v475_v22 }
 0x1b5   :  { %v585_v17 = vpop.permute.xlu2 %584 }
 0x1b6   :  { %vm593_vm4 = vcmp.eq.s32.totalorder %v528_v12, %v585_v17 }
 0x1b7   :  { %v601_v6 = vsel %vm593_vm4, %v1021_v13, 0.0  ;;  %v1035_v26 = vpop.eup %841 }
 0x1b8   :  { %616 = vadd.xlane.f32.xlu2 %v601_v6  ;;  %604 = vadd.xlane.f32.xlu0 %v595_v20 }
 0x1b9   :  { %608 = vadd.xlane.f32.xlu1 %v597_v21 }
 0x1bc   :  { %v564_v23 = vpop.permute.xlu1 %563 }
 0x1bd   :  { %vm590_vm10 = vcmp.eq.s32.totalorder %v528_v12, %v564_v23 }
 0x1bf   :  { %v550_v34 = vpop.permute.xlu0 %549 }
 0x1c0   :  { %479 = vadd.xlane.f32.xlu2 %v1023_v14  ;;  %612 = vadd.xlane.f32.xlu0 %v599_v24  ;;  %vm588_vm9 = vcmp.eq.s32.totalorder %v528_v12, %v550_v34  ;;  %v625_v24 = vrot.slane %v1053_v42, 6 }
 0x1c4   :  { %v578_v25 = vpop.permute.xlu1 %577 }
 0x1c5   :  { %vm592_vm8 = vcmp.eq.s32.totalorder %v528_v12, %v578_v25  ;;  %v622_v12 = vrot.slane %v1053_v42, 3  ;;  %v624_v25 = vrot.slane %v1053_v42, 5 }
 0x1c6   :  { %v600_v28 = vsel %vm592_vm8, %v1035_v26, 0.0 }
 0x1c7   :  { %614 = vadd.xlane.f32.xlu1 %v600_v28  ;;  %v630_v20 = vperm.slane %v622_v12, 0  ;;  %v657_v12 = vrot.slane %v1059_v49, 5 }
 0x1c8   :  { %485 = vadd.xlane.f32.xlu2 %v1027_v18 }
 0x1d0   :  { %491 = vadd.xlane.f32.xlu2 %v1035_v26 }
 0x1ee   :  { %v448_v29 = vpop.xlane.xlu2 %447 }
 0x1ef   :  { %v459_v30 = vsub.f32 %v995_v40, %v448_v29  ;;  %v444_v31 = vpop.xlane.xlu1 %443  ;;  %v894_v40 = vmov 0  }
 0x1f0   :  { %v457_v32 = vsub.f32 %v998_v39, %v444_v31  ;;  %827 = vset.pattern.permute.xlu1 %v894_v40  ;;  %828 = vset.pattern.permute.xlu0 %v894_v40  ;;  %v620_v39 = vrot.slane %v1053_v42, 1 }
 0x1f1   :  { %v471_v27 = vmul.f32 1.442695, %v459_v30  ;;  %829 = vset.pattern.permute.xlu2 %v894_v40  ;;  %v653_v30 = vrot.slane %v1059_v49, 1 }
 0x1f2   :  { %v467_v33 = vmul.f32 1.442695, %v457_v32  ;;  %v628_v47 = vperm.slane %v620_v39, 0 }
 0x1f3   :  { %843 = vpow2.f32 %v471_v27  ;;  %v633_v27 = vperm.slane %v625_v24, 0 }
 0x1f4   :  { %845 = vpow2.f32 %v467_v33  ;;  %v632_v33 = vperm.slane %v624_v25, 0 }
 0x1f9   :  { %v1042_v35 = vpop.eup %843 }
 0x1fa   :  { %v1044_v36 = vpop.eup %845  ;;  %487 = vadd.xlane.f32.xlu0 %v1042_v35  ;;  %v598_v38 = vsel %vm590_vm10, %v1042_v35, 0.0 }
 0x1fb   :  { %483 = vadd.xlane.f32.xlu1 %v1044_v36  ;;  %v596_v37 = vsel %vm588_vm9, %v1044_v36, 0.0 }
 0x1fc   :  { %606 = vadd.xlane.f32.xlu2 %v596_v37  ;;  %v661_v37 = vperm.slane %v653_v30, 0 }
 0x204   :  { %610 = vadd.xlane.f32.xlu2 %v598_v38 }
 0x21b   :  { %v482_v41 = vpop.xlane.xlu0 %481 }
 0x21c   :  { %847 = vrcp.f32 %v482_v41  ;;  %v490_v0 = vpop.xlane.xlu1 %489 }
 0x222   :  { %v848_v43 = vpop.eup %847 }
 0x223   :  { %v504_v44 = vmul.f32 %v848_v43, %v482_v41  ;;  %v494_v45 = vpop.xlane.xlu0 %493  ;;  %v660_v41 = vperm.slane %v1059_v49, 0 }
 0x224   :  { %849 = vrcp.f32 %v494_v45  ;;  %v603_v39 = vpop.xlane.xlu1 %602 }
 0x225   :  { %v512_v46 = vsub.f32 2.0, %v504_v44 }
 0x227   :  { %v520_v48 = vmul.f32 %v848_v43, %v512_v46 }
 0x229   :  { %v644_v50 = vmul.f32 %v628_v47, %v520_v48  ;;  %v677_v43 = vmul.f32 %v661_v37, %v520_v48 }
 0x22a   :  { %v850_v53 = vpop.eup %849 }
 0x22b   :  { %v617_v54 = vpop.xlane.xlu2 %616  ;;  %v510_v55 = vmul.f32 %v850_v53, %v494_v45  ;;  %691 = vperm.xlu1 %827, %v644_v50   ;;  %v655_v45 = vrot.slane %v1059_v49, 3  ;;  %v605_v46 = vpop.xlane.xlu0 %604 }
 0x22c   :  { %v741_v47 = vmul.f32 %v677_v43, %v605_v46 }
 0x22d   :  { %v518_v56 = vsub.f32 2.0, %v510_v55  ;;  %v663_v51 = vperm.slane %v655_v45, 0 }
 0x22f   :  { %v526_v59 = vmul.f32 %v850_v53, %v518_v56  ;;  %v658_v53 = vrot.slane %v1059_v49, 6 }
 0x231   :  { %v683_v60 = vmul.f32 %v667_v57, %v526_v59  ;;  %v650_v61 = vmul.f32 %v634_v58, %v526_v59  ;;  %v666_v56 = vperm.slane %v658_v53, 0 }
 0x233   :  { %v480_v62 = vpop.xlane.xlu2 %479  ;;  %v1063_v63 = vmul.f32 %v683_v60, %v617_v54  ;;  %721 = vperm.xlu0 %828, %v650_v61   ;;  %v609_v54 = vpop.xlane.xlu1 %608 }
 0x234   :  { %851 = vrcp.f32 %v480_v62  ;;  %v613_v57 = vpop.xlane.xlu0 %612 }
 0x235   :  { %853 = vrcp.f32 %v490_v0 }
 0x23a   :  { %v852_v1 = vpop.eup %851 }
 0x23b   :  { %v503_v8 = vmul.f32 %v852_v1, %v480_v62  ;;  %v486_v2 = vpop.xlane.xlu2 %485  ;;  %v854_v10 = vpop.eup %853 }
 0x23c   :  { %855 = vrcp.f32 %v486_v2  ;;  %v508_v19 = vmul.f32 %v854_v10, %v490_v0  ;;  %v615_v59 = vpop.xlane.xlu1 %614  ;;  %v654_v0 = vrot.slane %v1059_v49, 2 }
 0x23d   :  { %v511_v3 = vsub.f32 2.0, %v503_v8 }
 0x23e   :  { %v516_v22 = vsub.f32 2.0, %v508_v19  ;;  %v623_v19 = vrot.slane %v1053_v42, 4 }
 0x23f   :  { %v519_v7 = vmul.f32 %v852_v1, %v511_v3  ;;  %v621_v1 = vrot.slane %v1053_v42, 2 }
 0x240   :  { %v524_v31 = vmul.f32 %v854_v10, %v516_v22  ;;  %v631_v24 = vperm.slane %v623_v19, 0 }
 0x241   :  { %v643_v11 = vmul.f32 %v627_v4, %v519_v7  ;;  %v676_v44 = vmul.f32 %v660_v41, %v519_v7  ;;  %v662_v7 = vperm.slane %v654_v0, 0  ;;  %v629_v10 = vperm.slane %v621_v1, 0 }
 0x242   :  { %v856_v15 = vpop.eup %855  ;;  %v648_v40 = vmul.f32 %v632_v33, %v524_v31 }
 0x243   :  { %v506_v16 = vmul.f32 %v856_v15, %v486_v2  ;;  %v492_v17 = vpop.xlane.xlu2 %491  ;;  %686 = vperm.xlu0 %828, %v643_v11   ;;  %v740_v50 = vmul.f32 %v676_v44, %v603_v39 }
 0x244   :  { %857 = vrcp.f32 %v492_v17 }
 0x245   :  { %v514_v6 = vsub.f32 2.0, %v506_v16 }
 0x247   :  { %v522_v21 = vmul.f32 %v856_v15, %v514_v6 }
 0x249   :  { %v646_v23 = vmul.f32 %v630_v20, %v522_v21  ;;  %v679_v52 = vmul.f32 %v663_v51, %v522_v21  ;;  %v665_v21 = vperm.slane %v657_v12, 0 }
 0x24a   :  { %v858_v28 = vpop.eup %857 }
 0x24b   :  { %v509_v29 = vmul.f32 %v858_v28, %v492_v17  ;;  %701 = vperm.xlu1 %827, %v646_v23   ;;  %v743_v55 = vmul.f32 %v679_v52, %v609_v54  ;;  %v656_v23 = vrot.slane %v1059_v49, 4  ;;  %v681_v25 = vmul.f32 %v665_v21, %v524_v31 }
 0x24d   :  { %v517_v32 = vsub.f32 2.0, %v509_v29  ;;  %v745_v30 = vmul.f32 %v681_v25, %v613_v57 }
 0x24f   :  { %v525_v34 = vmul.f32 %v858_v28, %v517_v32  ;;  %v664_v28 = vperm.slane %v656_v23, 0 }
 0x251   :  { %v649_v38 = vmul.f32 %v633_v27, %v525_v34  ;;  %v682_v58 = vmul.f32 %v666_v56, %v525_v34 }
 0x253   :  { %716 = vperm.xlu2 %829, %v649_v38   ;;  %711 = vperm.xlu1 %827, %v648_v40   ;;  %v746_v48 = vmul.f32 %v682_v58, %v615_v59 }
 0x25b   :  { %750 = vperm.xlu1 %827, %v740_v50   ;;  %755 = vperm.xlu2 %829, %v741_v47  }
 0x263   :  { %765 = vperm.xlu1 %827, %v743_v55  }
 0x26b   :  { %780 = vperm.xlu1 %827, %v746_v48  }
 0x26d   :  { %v488_v60 = vpop.xlane.xlu0 %487 }
 0x26e   :  { %v484_v61 = vpop.xlane.xlu1 %483  ;;  %859 = vrcp.f32 %v488_v60 }
 0x26f   :  { %861 = vrcp.f32 %v484_v61  ;;  %v607_v6 = vpop.xlane.xlu2 %606 }
 0x274   :  { %v860_v62 = vpop.eup %859 }
 0x275   :  { %v862_v8 = vpop.eup %861  ;;  %v507_v4 = vmul.f32 %v860_v62, %v488_v60 }
 0x276   :  { %v505_v2 = vmul.f32 %v862_v8, %v484_v61 }
 0x277   :  { %v515_v15 = vsub.f32 2.0, %v507_v4  ;;  %v611_v27 = vpop.xlane.xlu2 %610 }
 0x278   :  { %v513_v3 = vsub.f32 2.0, %v505_v2 }
 0x279   :  { %v523_v22 = vmul.f32 %v860_v62, %v515_v15 }
 0x27a   :  { %v521_v11 = vmul.f32 %v862_v8, %v513_v3 }
 0x27b   :  { %v647_v29 = vmul.f32 %v631_v24, %v523_v22  ;;  %v680_v32 = vmul.f32 %v664_v28, %v523_v22 }
 0x27c   :  { %v678_v16 = vmul.f32 %v662_v7, %v521_v11  ;;  %v645_v17 = vmul.f32 %v629_v10, %v521_v11 }
 0x27d   :  { %v744_v33 = vmul.f32 %v680_v32, %v611_v27 }
 0x27e   :  { %v742_v20 = vmul.f32 %v678_v16, %v607_v6  ;;  %696 = vperm.xlu2 %829, %v645_v17  }
 0x280   :  { %760 = vperm.xlu0 %828, %v742_v20  }
 0x286   :  { %706 = vperm.xlu2 %829, %v647_v29  }
 0x288   :  { %775 = vperm.xlu0 %828, %v745_v30  }
 0x28e   :  { %770 = vperm.xlu2 %829, %v744_v33  }
 0x296   :  { %785 = vperm.xlu2 %829, %v1063_v63  }
 0x29d   :  { %v692_v42 = vpop.permute.xlu1 %691 }
 0x29e   :  { %v725_v37 = vmul.f32 %v1014_v5, %v692_v42 }
 0x2a0   :  { %v733_v38 = vadd.f32 1.0, %v725_v37 }
 0x2a5   :  { %v722_v31 = vpop.permute.xlu0 %721 }
 0x2ad   :  { %v717_v34 = vpop.permute.xlu2 %716 }
 0x2ae   :  { %v730_v52 = vmul.f32 %v1035_v26, %v717_v34  ;;  %v731_v26 = vmul.f32 %v1021_v13, %v722_v31 }
 0x2b0   :  { %v739_v60 = vadd.f32 1.0, %v731_v26 }
 0x2b5   :  { %v756_v49 = vpop.permute.xlu2 %755  ;;  %v687_v39 = vpop.permute.xlu0 %686 }
 0x2b6   :  { %v789_v40 = vadd.f32 %v756_v49, %v733_v38  ;;  %v724_v44 = vmul.f32 %v1023_v14, %v687_v39  ;;  %v738_v14 = vadd.f32 1.0, %v730_v52 }
 0x2b8   :  { %797 = vst [vmem:[%s1119_s8 + $0x8] sm:$0xff] %v789_v40  ;;  %v732_v45 = vadd.f32 1.0, %v724_v44 }
 0x2bd   :  { %v702_v41 = vpop.permute.xlu1 %701 }
 0x2be   :  { %v727_v47 = vmul.f32 %v1027_v18, %v702_v41 }
 0x2c0   :  { %v735_v5 = vadd.f32 1.0, %v727_v47 }
 0x2c5   :  { %v712_v43 = vpop.permute.xlu1 %711 }
 0x2c6   :  { %v729_v8 = vmul.f32 %v1016_v9, %v712_v43 }
 0x2c8   :  { %v737_v13 = vadd.f32 1.0, %v729_v8 }
 0x2cd   :  { %v751_v46 = vpop.permute.xlu1 %750 }
 0x2ce   :  { %v788_v63 = vadd.f32 %v751_v46, %v732_v45 }
 0x2d0   :  { %796 = vst [vmem:[%s1119_s8] sm:$0xff] %v788_v63 }
 0x2d5   :  { %v766_v50 = vpop.permute.xlu1 %765 }
 0x2d6   :  { %v791_v51 = vadd.f32 %v766_v50, %v735_v5 }
 0x2d8   :  { %799 = vst [vmem:[%s1119_s8 + $0x18] sm:$0xff] %v791_v51  ;;  %v697_v53 = vpop.permute.xlu2 %696 }
 0x2d9   :  { %v726_v48 = vmul.f32 %v1044_v36, %v697_v53 }
 0x2db   :  { %v734_v62 = vadd.f32 1.0, %v726_v48 }
 0x2dd   :  { %v781_v54 = vpop.permute.xlu1 %780 }
 0x2de   :  { %v794_v55 = vadd.f32 %v781_v54, %v738_v14 }
 0x2e0   :  { %802 = vst [vmem:[%s1119_s8 + $0x30] sm:$0xff] %v794_v55  ;;  %v707_v18 = vpop.permute.xlu2 %706 }
 0x2e1   :  { %v728_v56 = vmul.f32 %v1042_v35, %v707_v18 }
 0x2e3   :  { %v736_v57 = vadd.f32 1.0, %v728_v56 }
 0x2e8   :  { %v771_v58 = vpop.permute.xlu2 %770 }
 0x2e9   :  { %v792_v59 = vadd.f32 %v771_v58, %v736_v57 }
 0x2eb   :  { %800 = vst [vmem:[%s1119_s8 + $0x20] sm:$0xff] %v792_v59 }
 0x2f0   :  { %v786_v61 = vpop.permute.xlu2 %785 }
 0x2f1   :  { %v795_v0 = vadd.f32 %v786_v61, %v739_v60 }
 0x2f2   :  { %v761_v1 = vpop.permute.xlu0 %760 }
 0x2f3   :  { %803 = vst [vmem:[%s1119_s8 + $0x38] sm:$0xff] %v795_v0  ;;  %v790_v35 = vadd.f32 %v761_v1, %v734_v62 }
 0x2f5   :  { %798 = vst [vmem:[%s1119_s8 + $0x10] sm:$0xff] %v790_v35 }
 0x2fa   :  { %v776_v2 = vpop.permute.xlu0 %775 }
 0x2fb   :  { %v793_v3 = vadd.f32 %v776_v2, %v737_v13 }
 0x2fd   :  { %801 = vst [vmem:[%s1119_s8 + $0x28] sm:$0xff] %v793_v3 }
 0x2fe   :  { %808 = vsyncpa [#allocation3], 1 }

</bundles_post_ra>
